<compile_context>
chip_gen: v7x
topology: tpu7x:2x2x1
jax: 0.10.0
libtpu: 0.0.40
codegen_flags: <defaults>
</compile_context>

<pallas_src>
import jax
import jax.numpy as jnp
from jax.experimental import pallas as pl
from jax.experimental.pallas import tpu as pltpu

LN_EPS = 1e-5  # torch.nn.LayerNorm default


def sgu_kernel(x_ref, wt_ref, b_ref, out_ref):
    H = wt_ref.shape[0]

    xb = x_ref[...]                         # (tm, 2H), one DMA of the full row slab
    u = xb[:, :H]
    v = xb[:, H:].astype(jnp.float32)

    # LayerNorm statistics: single fused pass (sum + sum of squares), f32 math.
    inv_h = 1.0 / H
    s = jnp.sum(v, axis=-1, keepdims=True)
    sq = jnp.sum(v * v, axis=-1, keepdims=True)
    mean = s * inv_h
    var = sq * inv_h - mean * mean
    v_hat = (v - mean) * jax.lax.rsqrt(var + LN_EPS)

    # gamma is folded into wt, beta into b (done once on the host), so the branch is just
    # a matmul against the pre-transposed weight + bias, with f32 accumulation on the MXU.
    y = jnp.dot(v_hat.astype(wt_ref.dtype), wt_ref[...],
                preferred_element_type=jnp.float32) + b_ref[...]

    out_ref[...] = (u.astype(jnp.float32) * y).astype(out_ref.dtype)


def spatial_gating_unit(x, gamma, beta, w, b, *, row_tile=256):
    """x: (batch, seq, 2*hidden). gamma/beta: (hidden,). w: (hidden, hidden). b: (hidden,).

    Returns (batch, seq, hidden) = u * Linear(LayerNorm(v)).
    """
    B, S, D2 = x.shape
    H = D2 // 2
    assert 2 * H == D2, "last dim must be 2*hidden"
    M = B * S

    # Row-major reshape is free (no copy); u/v are split inside the kernel.
    x2 = x.reshape(M, D2)

    # Fold LN affine into the linear layer (one-time host cost):
    #   (v_hat*gamma + beta) @ W.T + b == v_hat @ (W*gamma).T + (b + W @ beta)
    compute_dtype = w.dtype
    w_f = w.astype(jnp.float32)
    wt = (w_f * gamma.astype(jnp.float32)[None, :]).T.astype(compute_dtype)   # (in, out)
    b_fold = (b.astype(jnp.float32) + w_f @ beta.astype(jnp.float32)).reshape(1, H)

    # Dtype-aware row tile: multiple of 8 (f32) / 16 (bf16), clamped to a divisor of M.
    sub = 16 if x.dtype == jnp.bfloat16 else 8
    assert M % sub == 0, "row count must be a multiple of the sublane tile"
    tm = min(row_tile, M)
    tm = max(sub, (tm // sub) * sub)
    while M % tm:
        tm -= sub
    assert tm >= sub and M % tm == 0

    grid = (M // tm,)

    out = pl.pallas_call(
        sgu_kernel,
        out_shape=jax.ShapeDtypeStruct((M, H), x.dtype),
        grid_spec=pltpu.PrefetchScalarGridSpec(
            num_scalar_prefetch=0,
            grid=grid,
            in_specs=[
                pl.BlockSpec((tm, D2), lambda i: (i, 0)),   # x rows (u | v together)
                pl.BlockSpec((H, H), lambda i: (0, 0)),     # pre-transposed, gamma-folded weight
                pl.BlockSpec((1, H), lambda i: (0, 0)),     # folded bias
            ],
            out_specs=pl.BlockSpec((tm, H), lambda i: (i, 0)),
        ),
        compiler_params=pltpu.CompilerParams(
            dimension_semantics=("parallel",),
        ),
    )(x2, wt, b_fold)

    return out.reshape(B, S, H)


def reference(x, gamma, beta, w, b):
    H = x.shape[-1] // 2
    u = x[..., :H].astype(jnp.float32)
    v = x[..., H:].astype(jnp.float32)
    mean = jnp.mean(v, axis=-1, keepdims=True)
    var = jnp.mean((v - mean) ** 2, axis=-1, keepdims=True)
    v_ln = (v - mean) * jax.lax.rsqrt(var + LN_EPS) * gamma.astype(jnp.float32) \
        + beta.astype(jnp.float32)
    y = v_ln @ w.T.astype(jnp.float32) + b.astype(jnp.float32)
    return (u * y).astype(x.dtype)


if __name__ == "__main__":
    key = jax.random.PRNGKey(0)
    batch, seq, hidden = 2, 8, 32

    k_x, k_w, k_b, k_g, k_be = jax.random.split(key, 5)
    x = jax.random.normal(k_x, (batch, seq, 2 * hidden), dtype=jnp.float32)

    # Parameters (nn.LayerNorm default is gamma=1, beta=0; use non-trivial values to
    # exercise the host-side affine folding as well).
    gamma = 1.0 + 0.1 * jax.random.normal(k_g, (hidden,), dtype=jnp.float32)
    beta = 0.1 * jax.random.normal(k_be, (hidden,), dtype=jnp.float32)
    # nn.Linear(hidden, hidden): weight (out, in), bias (out,).
    w = jax.random.normal(k_w, (hidden, hidden), dtype=jnp.float32) * (1.0 / hidden ** 0.5)
    b = jax.random.normal(k_b, (hidden,), dtype=jnp.float32) * 0.01

    out = spatial_gating_unit(x, gamma, beta, w, b)
    out = jax.block_until_ready(out)

    ref = reference(x, gamma, beta, w, b)
    assert out.shape == (batch, seq, hidden), out.shape
    assert jnp.allclose(out, ref, atol=1e-4, rtol=1e-4), float(jnp.max(jnp.abs(out - ref)))

    print("KERNEL_OK")
</pallas_src>

<mosaic_0001>
module attributes {stable_mosaic.version = 11 : i64} {
  func.func @sgu_kernel(%arg0: i32, %arg1: memref<16x64xf32, #tpu.memory_space<vmem>>, %arg2: memref<32x32xf32, #tpu.memory_space<vmem>>, %arg3: memref<1x32xf32, #tpu.memory_space<vmem>>, %arg4: memref<16x32xf32, #tpu.memory_space<vmem>>) attributes {dimension_semantics = [#tpu.dimension_semantics<parallel>], iteration_bounds = array<i64: 1>, scalar_prefetch = 0 : i64, scratch_operands = 0 : i64, tpu.core_type = #tpu.core_type<tc>, window_params = [{transform_indices = @transform_0, window_bounds = array<i64: 16, 64>}, {pipeline_mode = #tpu.pipeline_mode<synchronous>, transform_indices = @transform_1, window_bounds = array<i64: 32, 32>}, {pipeline_mode = #tpu.pipeline_mode<synchronous>, transform_indices = @transform_2, window_bounds = array<i64: 1, 32>}, {transform_indices = @transform_3, window_bounds = array<i64: 16, 32>}]} {
    %c0 = arith.constant 0 : index
    %c0_0 = arith.constant 0 : index
    %0 = vector.load %arg1[%c0, %c0_0] : memref<16x64xf32, #tpu.memory_space<vmem>>, vector<16x64xf32>
    %1 = vector.extract_strided_slice %0 {offsets = [0, 0], sizes = [16, 32], strides = [1, 1]} : vector<16x64xf32> to vector<16x32xf32>
    %2 = vector.extract_strided_slice %0 {offsets = [0, 32], sizes = [16, 32], strides = [1, 1]} : vector<16x64xf32> to vector<16x32xf32>
    %cst = arith.constant dense<0.000000e+00> : vector<16xf32>
    %3 = vector.multi_reduction <add>, %2, %cst [1] : vector<16x32xf32> to vector<16xf32>
    %4 = vector.shape_cast %3 : vector<16xf32> to vector<16x1xf32>
    %5 = arith.mulf %2, %2 : vector<16x32xf32>
    %cst_1 = arith.constant dense<0.000000e+00> : vector<16xf32>
    %6 = vector.multi_reduction <add>, %5, %cst_1 [1] : vector<16x32xf32> to vector<16xf32>
    %7 = vector.shape_cast %6 : vector<16xf32> to vector<16x1xf32>
    %cst_2 = arith.constant 3.125000e-02 : f32
    %8 = vector.broadcast %cst_2 : f32 to vector<16x1xf32>
    %9 = arith.mulf %4, %8 : vector<16x1xf32>
    %cst_3 = arith.constant 3.125000e-02 : f32
    %10 = vector.broadcast %cst_3 : f32 to vector<16x1xf32>
    %11 = arith.mulf %7, %10 : vector<16x1xf32>
    %12 = arith.mulf %9, %9 : vector<16x1xf32>
    %13 = arith.subf %11, %12 : vector<16x1xf32>
    %14 = vector.broadcast %9 : vector<16x1xf32> to vector<16x32xf32>
    %15 = arith.subf %2, %14 : vector<16x32xf32>
    %cst_4 = arith.constant 9.99999974E-6 : f32
    %16 = vector.broadcast %cst_4 : f32 to vector<16x1xf32>
    %17 = arith.addf %13, %16 : vector<16x1xf32>
    %18 = math.rsqrt %17 : vector<16x1xf32>
    %19 = vector.broadcast %18 : vector<16x1xf32> to vector<16x32xf32>
    %20 = arith.mulf %15, %19 : vector<16x32xf32>
    %c0_5 = arith.constant 0 : index
    %c0_6 = arith.constant 0 : index
    %21 = vector.load %arg2[%c0_5, %c0_6] : memref<32x32xf32, #tpu.memory_space<vmem>>, vector<32x32xf32>
    %cst_7 = arith.constant dense<0.000000e+00> : vector<16x32xf32>
    %22 = tpu.matmul %20, %21, %cst_7 {dimension_numbers = #tpu.dot_dimension_numbers<[1], [0], [0], [1], [0, 0, 1, 1], [], []>} : vector<16x32xf32>, vector<32x32xf32>, vector<16x32xf32> -> vector<16x32xf32>
    %c0_8 = arith.constant 0 : index
    %c0_9 = arith.constant 0 : index
    %23 = vector.load %arg3[%c0_8, %c0_9] : memref<1x32xf32, #tpu.memory_space<vmem>>, vector<1x32xf32>
    %24 = vector.broadcast %23 : vector<1x32xf32> to vector<16x32xf32>
    %25 = arith.addf %22, %24 : vector<16x32xf32>
    %26 = arith.mulf %1, %25 : vector<16x32xf32>
    %c0_10 = arith.constant 0 : index
    %c0_11 = arith.constant 0 : index
    %27 = vector.load %arg4[%c0_10, %c0_11] : memref<16x32xf32, #tpu.memory_space<vmem>>, vector<16x32xf32>
    tpu.vector_store %arg4[%c0_10, %c0_11], %26 {strides = array<i32>} : memref<16x32xf32, #tpu.memory_space<vmem>>, vector<16x32xf32>,
    return
  }
  func.func @transform_0(%arg0: i32) -> (i32, i32) {
    %c0_i32 = arith.constant 0 : i32
    %c0_i32_0 = arith.constant 0 : i32
    return %arg0, %c0_i32 : i32, i32
  }
  func.func @transform_1(%arg0: i32) -> (i32, i32) {
    %c0_i32 = arith.constant 0 : i32
    %c0_i32_0 = arith.constant 0 : i32
    %c0_i32_1 = arith.constant 0 : i32
    return %c0_i32, %c0_i32_0 : i32, i32
  }
  func.func @transform_2(%arg0: i32) -> (i32, i32) {
    %c0_i32 = arith.constant 0 : i32
    %c0_i32_0 = arith.constant 0 : i32
    %c0_i32_1 = arith.constant 0 : i32
    return %c0_i32, %c0_i32_0 : i32, i32
  }
  func.func @transform_3(%arg0: i32) -> (i32, i32) {
    %c0_i32 = arith.constant 0 : i32
    %c0_i32_0 = arith.constant 0 : i32
    return %arg0, %c0_i32 : i32, i32
  }
}

</mosaic_0001>

<bundles_post_ra>
// kernel: tpu_custom_call.1
= control target key start
LH: loop header
LB: loop body
LE: loop exit
PB: predicated region body
PF: predicated region fallthrough
CT: control target
= control target key end

     0   :  { %8 = vsyncpa [#allocation3], 0  ;;  %s422_s0 = inlined_call_operand.hbm [shape: f32[16,64], index: 0, kind: input, shape index: {}]   ;;  %s423_s1 = inlined_call_operand.hbm [shape: f32[32,32], index: 1, kind: input, shape index: {}]   ;;  %s424_s2 = inlined_call_operand.vmem [shape: f32[1,32], index: 2, kind: input, shape index: {}]   ;;  %s425_s3 = inlined_call_operand.hbm [shape: f32[16,32], index: 3, kind: output, shape index: {}]  }
   0x1   :  { %9 = vsyncpa [#allocation6], 0 }
   0x2   :  { %10 = vsyncpa [#allocation4], 0  ;;  %s320_s12 = smov [#allocation2]   ;;  %s248_s16 = scalar_lea.hbm %s422_s0, 256 }
   0x3   :  { %s16_s13 = sshll.u32 %s320_s12, 4  ;;  %p249_p0 = scmp.ne.s32.totalorder %s422_s0, %s248_s16  ;;  %s17_s13 = int_to_ptr.vmem [resolvable:$true] %s16_s13 }
   0x4   :  { %p252_p1 = scmp.lt.u32.totalorder %s248_s16, %s422_s0 }
   0x6   :  { %p254_p2 = pnand %p252_p1, %p249_p0 }
   0x8   :  { %257 = shalt.err (!%p254_p2)
}
   0x9   :  { %s258_s21 = scalar_lea.vmem %s17_s13, 256  ;;  %p263_p4 = scmp.lt.s32.totalorder %s17_s13, %s17_s13 }
   0xa   :  { %p259_p3 = scmp.ne.s32.totalorder %s17_s13, %s258_s21  ;;  %p264_p5 = scmp.lt.s32.totalorder %s258_s21, %s258_s21 }
   0xc   :  { %p265_p6 = por %p264_p5, %p263_p4 }
   0xe   :  { %p266_p7 = pnand %p265_p6, %p259_p3 }
  0x10   :  { %269 = shalt.err (!%p266_p7)
}
  0x11   :  { %s321_s22 = smov 128   ;;  %s322_s23 = smov 8  }
  0x12   :  { %22 = dma.hbm_to_vmem [thread:$0]  %s422_s0, 256, %s17_s13, [#allocation3], %s321_s22, %s321_s22, %s322_s23  }
  0x13   :  { %s323_s26 = smov [#allocation5]   ;;  %s270_s30 = scalar_lea.hbm %s423_s1, 512 }
  0x14   :  { %s28_s27 = sshll.u32 %s323_s26, 4  ;;  %p271_p8 = scmp.ne.s32.totalorder %s423_s1, %s270_s30  ;;  %s29_s27 = int_to_ptr.vmem [resolvable:$true] %s28_s27 }
  0x15   :  { %p274_p9 = scmp.lt.u32.totalorder %s270_s30, %s423_s1 }
  0x17   :  { %p276_p10 = pnand %p274_p9, %p271_p8 }
  0x19   :  { %279 = shalt.err (!%p276_p10)
}
  0x1a   :  { %s280_s8 = scalar_lea.vmem %s29_s27, 512  ;;  %p285_p12 = scmp.lt.s32.totalorder %s29_s27, %s29_s27 }
  0x1b   :  { %p281_p11 = scmp.ne.s32.totalorder %s29_s27, %s280_s8  ;;  %p286_p13 = scmp.lt.s32.totalorder %s280_s8, %s280_s8 }
  0x1d   :  { %p287_p0 = por %p286_p13, %p285_p12 }
  0x1f   :  { %p288_p1 = pnand %p287_p0, %p281_p11 }
  0x21   :  { %291 = shalt.err (!%p288_p1)
}
  0x22   :  { %34 = dma.hbm_to_vmem [thread:$0]  %s423_s1, 512, %s29_s27, [#allocation6], %s321_s22, %s321_s22, %s322_s23  }
  0x23   :  { %314 = dma.done.wait [#allocation3], 256  }
  0x24   :  { %315 = vsyncadd [#allocation3], 4294967040 }
  0x25   :  { %316 = dma.done.wait [#allocation6], 512  }
  0x26   :  { %317 = vsyncadd [#allocation6], 4294966784  ;;  %v376_v0 = vld [vmem:[#allocation2] sm:$0xff]  ;;  %v378_v1 = vld [vmem:[#allocation2 + $0x8] sm:$0xff]  ;;  %s324_s10 = smov 96   ;;  %vm53_vm0 = vcmask 261120  }
  0x27   :  { %47 = vrot.lane.b32.xlu0 %v376_v0, %s324_s10  ;;  %v60_v2 = vmul.f32 %v376_v0, %v376_v0  ;;  %v61_v3 = vmul.f32 %v378_v1, %v378_v1  ;;  %v92_v12 = vld [vmem:[#allocation5] sm:$0xff]  ;;  %v93_v13 = vld [vmem:[#allocation5 + $0x8] sm:$0xff]  ;;  %v94_v25 = vld [vmem:[#allocation5 + $0x10] sm:$0xff]  ;;  %s325_s12 = smov [#allocation7]  }
  0x28   :  { %v230_v14 = vpack.c.bf16 %v93_v13, %v92_v12  ;;  %v95_v26 = vld [vmem:[#allocation5 + $0x18] sm:$0xff]  ;;  %v210_v40 = vld [vmem:[%s424_s2] ss:$0 sm:$0xff]  ;;  %s197_s13 = sshll.u32 %s325_s12, 4  ;;  %s198_s13 = int_to_ptr.vmem [resolvable:$true] %s197_s13 }
  0x29   :  { %64 = vrot.lane.b32.xlu1 %v60_v2, %s324_s10  ;;  %v234_v29 = vpack.c.bf16 %v95_v26, %v94_v25  ;;  %s292_s14 = scalar_lea.vmem %s198_s13, 256  ;;  %p297_p3 = scmp.lt.s32.totalorder %s198_s13, %s198_s13 }
  0x2a   :  { %231 = vmatprep.subr.bf16.mxu0 %v230_v14  ;;  %p293_p2 = scmp.ne.s32.totalorder %s198_s13, %s292_s14  ;;  %p298_p4 = scmp.lt.s32.totalorder %s292_s14, %s292_s14 }
  0x2b   :  { %49 = vrot.lane.b32.xlu0 %v378_v1, %s324_s10  ;;  %233 = vmatpush3.bf16.msra.mxu0 %v230_v14 }
  0x2c   :  { %235 = vmatprep.subr.bf16.mxu0 %v234_v29  ;;  %p299_p5 = por %p298_p4, %p297_p3 }
  0x2d   :  { %66 = vrot.lane.b32.xlu1 %v61_v3, %s324_s10 }
  0x2e   :  { %p300_p6 = pnand %p299_p5, %p293_p2 }
  0x2f   :  { %237 = vmatpush3.bf16.msra.mxu0 %v234_v29 }
  0x99   :  { %v48_v4 = vpop.permute.xlu0 %47 }
  0x9a   :  { %v54_v5 = vsel %vm53_vm0, %v48_v4, 0.0 }
  0x9b   :  { %55 = vadd.xlane.f32.xlu0 %v54_v5  ;;  %v65_v6 = vpop.permute.xlu1 %64 }
  0x9c   :  { %v70_v7 = vsel %vm53_vm0, %v65_v6, 0.0 }
  0x9d   :  { %v50_v8 = vpop.permute.xlu0 %49 }
  0x9e   :  { %v57_v9 = vsel %vm53_vm0, %v50_v8, 0.0 }
  0x9f   :  { %71 = vadd.xlane.f32.xlu0 %v70_v7  ;;  %58 = vadd.xlane.f32.xlu1 %v57_v9  ;;  %v67_v10 = vpop.permute.xlu1 %66 }
  0xa0   :  { %v73_v11 = vsel %vm53_vm0, %v67_v10, 0.0 }
  0xa3   :  { %74 = vadd.xlane.f32.xlu0 %v73_v11 }
 0x128   :  { %v56_v15 = vpop.xlane.xlu0 %55 }
 0x129   :  { %v76_v16 = vmul.f32 0.03125, %v56_v15 }
 0x12b   :  { %v80_v19 = vmul.f32 %v76_v16, %v76_v16  ;;  %v84_v32 = vsub.f32 %v376_v0, %v76_v16 }
 0x12c   :  { %v72_v17 = vpop.xlane.xlu0 %71  ;;  %v59_v18 = vpop.xlane.xlu1 %58 }
 0x12d   :  { %v78_v20 = vmul.f32 0.03125, %v72_v17  ;;  %v77_v21 = vmul.f32 0.03125, %v59_v18 }
 0x12f   :  { %v82_v22 = vsub.f32 %v78_v20, %v80_v19  ;;  %v81_v23 = vmul.f32 %v77_v21, %v77_v21  ;;  %v85_v35 = vsub.f32 %v378_v1, %v77_v21 }
 0x130   :  { %v75_v24 = vpop.xlane.xlu0 %74 }
 0x131   :  { %v86_v27 = vadd.f32 1e-05, %v82_v22  ;;  %v79_v28 = vmul.f32 0.03125, %v75_v24 }
 0x133   :  { %244 = vrsqrt.f32 %v86_v27  ;;  %v83_v30 = vsub.f32 %v79_v28, %v81_v23 }
 0x135   :  { %v87_v31 = vadd.f32 1e-05, %v83_v30 }
 0x137   :  { %246 = vrsqrt.f32 %v87_v31 }
 0x13d   :  { %v245_v33 = vpop.eup %244 }
 0x13e   :  { %v90_v34 = vmul.f32 %v245_v33, %v84_v32 }
 0x140   :  { %105 = vrot.lane.b32.xlu1 %v90_v34, %s324_s10 }
 0x141   :  { %v247_v36 = vpop.eup %246 }
 0x142   :  { %v91_v37 = vmul.f32 %v247_v36, %v85_v35 }
 0x144   :  { %107 = vrot.lane.b32.xlu0 %v91_v37, %s324_s10 }
 0x1b2   :  { %v106_v38 = vpop.permute.xlu1 %105 }
 0x1b3   :  { %227 = vmatprep.mubr.msk.f32.mxu0 %vm53_vm0, %v106_v38 }
 0x1b6   :  { %v108_v39 = vpop.permute.xlu0 %107 }
 0x1b7   :  { %228 = vmatmul.mubr.msk.f32.vlgmr.msra.gmra.mrb[0].mxu0 %vm53_vm0, %v108_v39 }
 0x28a   :  { %v229_v41 = vpop.f32.mrb[0].mxu0 }
 0x28b   :  { %v185_v42 = vadd.f32 %v229_v41, %v210_v40  ;;  %v179_v43 = vpop.f32.mrb[1].mxu0 }
 0x28c   :  { %v180_v44 = vadd.f32 %v210_v40, %v179_v43 }
 0x28d   :  { %v189_v45 = vmul.f32 %v185_v42, %v378_v1 }
 0x28e   :  { %v188_v46 = vmul.f32 %v180_v44, %v376_v0 }
 0x28f   :  { %191 = vst.msk [vmem:[#allocation7 + $0x8] sm:$0xff] %vm53_vm0, %v189_v45 }
 0x290   :  { %190 = vst.msk [vmem:[#allocation7] sm:$0xff] %vm53_vm0, %v188_v46 }
 0x291   :  { %303 = shalt.err (!%p300_p6)
}
 0x292   :  { %s304_s16 = scalar_lea.hbm %s425_s3, 256 }
 0x293   :  { %p305_p7 = scmp.ne.s32.totalorder %s425_s3, %s304_s16  ;;  %p308_p8 = scmp.lt.u32.totalorder %s304_s16, %s425_s3 }
 0x295   :  { %p310_p9 = pnand %p308_p8, %p305_p7 }
 0x297   :  { %313 = shalt.err (!%p310_p9)
}
 0x298   :  { %203 = dma.vmem_to_hbm [thread:$0]  %s198_s13, 256, %s425_s3, [#allocation4], %s321_s22, %s321_s22, %s322_s23  }
 0x299   :  { %318 = dma.done.wait [#allocation4], 256  }
 0x29a   :  { %319 = vsyncadd [#allocation4], 4294967040 }
 0x29b   :  { %207 = vsyncpa [#allocation3], 1 }
 0x29c   :  { %208 = vsyncpa [#allocation6], 1 }
 0x29d   :  { %209 = vsyncpa [#allocation4], 1 }

</bundles_post_ra>
